<compile_context>
chip_gen: v7x
topology: tpu7x:2x2x1
jax: 0.10.0
libtpu: 0.0.40
codegen_flags: <defaults>
</compile_context>

<pallas_src>
import functools

import jax
import jax.numpy as jnp
from jax import lax
from jax.experimental import pallas as pl
from jax.experimental.pallas import tpu as pltpu


def _round_up(x, m):
    return (x + m - 1) // m * m


def _wce_kernel(logits_ref, target_ref, weight_ref,
                num_ref, den_ref,
                acc_num_ref, acc_den_ref, *, hw, tile_hw):
    """One (batch, spatial-tile) grid step of weighted cross entropy.

    logits_ref : (1, C, tile_hw)  float   (classes on sublanes, spatial on lanes)
    target_ref : (1, 1, tile_hw)  int32
    weight_ref : (C, 1)           float
    num_ref    : (1, 1, 1)        float32  per-batch partial  sum_i w[t_i] * nll_i
    den_ref    : (1, 1, 1)        float32  per-batch partial  sum_i w[t_i]
    acc_*      : (1, tile_hw)     float32  VMEM running accumulators over spatial tiles
    """
    s = pl.program_id(1)

    @pl.when(s == 0)
    def _():
        acc_num_ref[...] = jnp.zeros_like(acc_num_ref)
        acc_den_ref[...] = jnp.zeros_like(acc_den_ref)

    logits = logits_ref[0].astype(jnp.float32)            # (C, tile_hw)
    tgt = target_ref[0]                                    # (1, tile_hw) int32
    w = weight_ref[...].astype(jnp.float32)                # (C, 1)
    c = logits.shape[0]

    # Numerically stable log-sum-exp over the class (sublane) axis.
    m = jnp.max(logits, axis=0, keepdims=True)             # (1, tile_hw)
    shifted = logits - m                                    # (C, tile_hw)
    lse = jnp.log(jnp.sum(jnp.exp(shifted), axis=0, keepdims=True))  # (1, tile_hw)

    # One-hot select of the target class along sublanes (no full logp matrix).
    cls = lax.broadcasted_iota(jnp.int32, (c, tile_hw), 0)  # (C, tile_hw)
    onehot = cls == tgt                                      # (C, tile_hw) bool

    x_t = jnp.sum(jnp.where(onehot, shifted, 0.0), axis=0, keepdims=True)  # (1, tile_hw)
    w_t = jnp.sum(jnp.where(onehot, w, 0.0), axis=0, keepdims=True)        # (1, tile_hw)

    nll = lse - x_t                                          # -log p(target), (1, tile_hw)

    # Mask lanes past the true spatial extent (ragged last tile / block padding).
    lane = lax.broadcasted_iota(jnp.int32, (1, tile_hw), 1)
    valid = (s * tile_hw + lane) < hw

    acc_num_ref[...] += jnp.where(valid, w_t * nll, 0.0)
    acc_den_ref[...] += jnp.where(valid, w_t, 0.0)

    @pl.when(s == pl.num_programs(1) - 1)
    def _():
        num_ref[...] = jnp.sum(acc_num_ref[...], axis=-1, keepdims=True).reshape(1, 1, 1)
        den_ref[...] = jnp.sum(acc_den_ref[...], axis=-1, keepdims=True).reshape(1, 1, 1)


def cross_entropy_loss_with_weight(pred, target, weight=None, *, tile_hw=None,
                                   vmem_limit_bytes=32 * 1024 * 1024):
    """pred: [N, C, H, W] float, target: [N, H, W] int, weight: [C] float (or None).

    Returns scalar float32 loss matching
    torch.nn.CrossEntropyLoss(weight=weight)(pred, target)  (weighted mean).
    """
    N, C, H, W = pred.shape
    HW = H * W

    if weight is None:
        weight = jnp.ones((C,), dtype=jnp.float32)

    if tile_hw is None:
        # Per-lane VMEM bytes: logits (2 buffers x C x 4B) + targets (2 x 4B)
        # + 2 f32 accumulators.  Keep all tile buffers within ~8 MiB so we sit
        # comfortably under the scoped VMEM limit on every generation
        # (v7x: 64 MiB physical / 32 MiB scoped).
        budget = 8 * 1024 * 1024
        per_lane = 4 * (2 * C + 4)
        cap = max(128, (budget // per_lane) // 128 * 128)
        tile_hw = min(_round_up(HW, 128), cap, 16384)

    # Free views (no transpose, no extra HBM traffic): spatial axis on lanes.
    logits3d = pred.reshape(N, C, HW)
    target3d = target.reshape(N, 1, HW).astype(jnp.int32)
    weight2d = weight.reshape(C, 1).astype(jnp.float32)

    grid = (N, pl.cdiv(HW, tile_hw))
    kernel = functools.partial(_wce_kernel, hw=HW, tile_hw=tile_hw)

    num, den = pl.pallas_call(
        kernel,
        out_shape=(jax.ShapeDtypeStruct((N, 1, 1), jnp.float32),
                   jax.ShapeDtypeStruct((N, 1, 1), jnp.float32)),
        grid_spec=pltpu.PrefetchScalarGridSpec(
            num_scalar_prefetch=0,
            grid=grid,
            in_specs=[
                pl.BlockSpec((1, C, tile_hw), lambda n, s: (n, 0, s)),
                pl.BlockSpec((1, 1, tile_hw), lambda n, s: (n, 0, s)),
                pl.BlockSpec((C, 1), lambda n, s: (0, 0)),
            ],
            out_specs=[
                pl.BlockSpec((1, 1, 1), lambda n, s: (n, 0, 0)),
                pl.BlockSpec((1, 1, 1), lambda n, s: (n, 0, 0)),
            ],
            scratch_shapes=[pltpu.VMEM((1, tile_hw), jnp.float32),
                            pltpu.VMEM((1, tile_hw), jnp.float32)],
        ),
        compiler_params=pltpu.CompilerParams(
            dimension_semantics=("parallel", "arbitrary"),
            vmem_limit_bytes=vmem_limit_bytes),
    )(logits3d, target3d, weight2d)

    # Tiny final reduction + division in plain JAX (per-batch f32 partials).
    return jnp.sum(num) / jnp.sum(den)


def _reference(pred, target, weight):
    N, C, H, W = pred.shape
    logits2d = jnp.transpose(pred, (0, 2, 3, 1)).reshape(-1, C).astype(jnp.float32)
    t = target.reshape(-1).astype(jnp.int32)
    logp = jax.nn.log_softmax(logits2d, axis=-1)
    nll = -jnp.take_along_axis(logp, t[:, None], axis=-1)[:, 0]
    w_t = weight.astype(jnp.float32)[t]
    return jnp.sum(w_t * nll) / jnp.sum(w_t)


if __name__ == "__main__":
    key = jax.random.PRNGKey(0)
    k1, k2 = jax.random.split(key)

    N, C, H, W = 2, 4, 16, 16
    pred = jax.random.normal(k1, (N, C, H, W), dtype=jnp.float32)
    target = jax.random.randint(k2, (N, H, W), 0, C, dtype=jnp.int32)
    # deterministic per-class weights (synthetic; module would receive these)
    weight = jnp.linspace(0.5, 2.0, C, dtype=jnp.float32)

    loss = cross_entropy_loss_with_weight(pred, target, weight)
    loss = jax.block_until_ready(loss)

    ref = _reference(pred, target, weight)
    assert jnp.allclose(loss, ref, rtol=1e-5, atol=1e-5), (loss, ref)

    print("KERNEL_OK")
</pallas_src>

<mosaic_0001>
module attributes {stable_mosaic.version = 11 : i64} {
  func.func @_wce_kernel(%arg0: i32, %arg1: i32, %arg2: memref<1x4x256xf32, #tpu.memory_space<vmem>>, %arg3: memref<1x1x256xi32, #tpu.memory_space<vmem>>, %arg4: memref<4x1xf32, #tpu.memory_space<vmem>>, %arg5: memref<1x1x1xf32, #tpu.memory_space<vmem>>, %arg6: memref<1x1x1xf32, #tpu.memory_space<vmem>>, %arg7: memref<1x256xf32, #tpu.memory_space<vmem>>, %arg8: memref<1x256xf32, #tpu.memory_space<vmem>>) attributes {dimension_semantics = [#tpu.dimension_semantics<parallel>, #tpu.dimension_semantics<arbitrary>], iteration_bounds = array<i64: 2, 1>, scalar_prefetch = 0 : i64, scratch_operands = 2 : i64, tpu.core_type = #tpu.core_type<tc>, window_params = [{transform_indices = @transform_0, window_bounds = array<i64: 1, 4, 256>}, {transform_indices = @transform_1, window_bounds = array<i64: 1, 1, 256>}, {pipeline_mode = #tpu.pipeline_mode<synchronous>, transform_indices = @transform_2, window_bounds = array<i64: 4, 1>}, {transform_indices = @transform_3, window_bounds = array<i64: 1, 1, 1>}, {transform_indices = @transform_4, window_bounds = array<i64: 1, 1, 1>}]} {
    %c0_i32 = arith.constant 0 : i32
    %0 = arith.cmpi eq, %arg1, %c0_i32 : i32
    %1 = arith.extui %0 : i1 to i32
    %c0_i32_0 = arith.constant 0 : i32
    %2 = arith.cmpi ne, %1, %c0_i32_0 : i32
    scf.if %2 {
      %cst_26 = arith.constant 0.000000e+00 : f32
      %50 = vector.broadcast %cst_26 : f32 to vector<1x256xf32>
      %c0_27 = arith.constant 0 : index
      %c0_28 = arith.constant 0 : index
      %51 = vector.load %arg7[%c0_27, %c0_28] : memref<1x256xf32, #tpu.memory_space<vmem>>, vector<1x256xf32>
      tpu.vector_store %arg7[%c0_27, %c0_28], %50 {strides = array<i32>} : memref<1x256xf32, #tpu.memory_space<vmem>>, vector<1x256xf32>,
      %cst_29 = arith.constant 0.000000e+00 : f32
      %52 = vector.broadcast %cst_29 : f32 to vector<1x256xf32>
      %c0_30 = arith.constant 0 : index
      %c0_31 = arith.constant 0 : index
      %53 = vector.load %arg8[%c0_30, %c0_31] : memref<1x256xf32, #tpu.memory_space<vmem>>, vector<1x256xf32>
      tpu.vector_store %arg8[%c0_30, %c0_31], %52 {strides = array<i32>} : memref<1x256xf32, #tpu.memory_space<vmem>>, vector<1x256xf32>,
    } else {
    }
    %c0 = arith.constant 0 : index
    %c0_1 = arith.constant 0 : index
    %c0_2 = arith.constant 0 : index
    %3 = vector.load %arg2[%c0, %c0_1, %c0_2] : memref<1x4x256xf32, #tpu.memory_space<vmem>>, vector<1x4x256xf32>
    %4 = vector.shape_cast %3 : vector<1x4x256xf32> to vector<4x256xf32>
    %c0_3 = arith.constant 0 : index
    %c0_4 = arith.constant 0 : index
    %c0_5 = arith.constant 0 : index
    %5 = vector.load %arg3[%c0_3, %c0_4, %c0_5] : memref<1x1x256xi32, #tpu.memory_space<vmem>>, vector<1x1x256xi32>
    %6 = vector.shape_cast %5 : vector<1x1x256xi32> to vector<1x256xi32>
    %c0_6 = arith.constant 0 : index
    %c0_7 = arith.constant 0 : index
    %7 = vector.load %arg4[%c0_6, %c0_7] : memref<4x1xf32, #tpu.memory_space<vmem>>, vector<4x1xf32>
    %cst = arith.constant dense<0xFF800000> : vector<256xf32>
    %8 = vector.multi_reduction <maximumf>, %4, %cst [0] : vector<4x256xf32> to vector<256xf32>
    %9 = vector.shape_cast %8 : vector<256xf32> to vector<1x256xf32>
    %10 = vector.broadcast %9 : vector<1x256xf32> to vector<4x256xf32>
    %11 = arith.subf %4, %10 : vector<4x256xf32>
    %12 = math.exp %11 : vector<4x256xf32>
    %cst_8 = arith.constant dense<0.000000e+00> : vector<256xf32>
    %13 = vector.multi_reduction <add>, %12, %cst_8 [0] : vector<4x256xf32> to vector<256xf32>
    %14 = vector.shape_cast %13 : vector<256xf32> to vector<1x256xf32>
    %15 = math.log %14 : vector<1x256xf32>
    %16 = tpu.iota {dimensions = array<i32: 0>} : vector<4x256xi32>
    %17 = vector.broadcast %6 : vector<1x256xi32> to vector<4x256xi32>
    %18 = arith.cmpi eq, %16, %17 : vector<4x256xi32>
    %cst_9 = arith.constant 0.000000e+00 : f32
    %19 = vector.broadcast %cst_9 : f32 to vector<4x256xf32>
    %20 = arith.select %18, %11, %19 : vector<4x256xi1>, vector<4x256xf32>
    %cst_10 = arith.constant dense<0.000000e+00> : vector<256xf32>
    %21 = vector.multi_reduction <add>, %20, %cst_10 [0] : vector<4x256xf32> to vector<256xf32>
    %22 = vector.shape_cast %21 : vector<256xf32> to vector<1x256xf32>
    %cst_11 = arith.constant 0.000000e+00 : f32
    %23 = vector.shape_cast %7 : vector<4x1xf32> to vector<4x1xf32>
    %24 = vector.broadcast %23 : vector<4x1xf32> to vector<4x256xf32>
    %25 = vector.broadcast %cst_11 : f32 to vector<4x256xf32>
    %26 = arith.select %18, %24, %25 : vector<4x256xi1>, vector<4x256xf32>
    %cst_12 = arith.constant dense<0.000000e+00> : vector<256xf32>
    %27 = vector.multi_reduction <add>, %26, %cst_12 [0] : vector<4x256xf32> to vector<256xf32>
    %28 = vector.shape_cast %27 : vector<256xf32> to vector<1x256xf32>
    %29 = arith.subf %15, %22 : vector<1x256xf32>
    %30 = tpu.iota {dimensions = array<i32: 1>} : vector<1x256xi32>
    %c256_i32 = arith.constant 256 : i32
    %31 = arith.muli %arg1, %c256_i32 : i32
    %32 = vector.broadcast %31 : i32 to vector<1x256xi32>
    %33 = arith.addi %32, %30 : vector<1x256xi32>
    %c256_i32_13 = arith.constant 256 : i32
    %34 = vector.broadcast %c256_i32_13 : i32 to vector<1x256xi32>
    %35 = arith.cmpi slt, %33, %34 : vector<1x256xi32>
    %c0_14 = arith.constant 0 : index
    %c0_15 = arith.constant 0 : index
    %36 = vector.load %arg7[%c0_14, %c0_15] : memref<1x256xf32, #tpu.memory_space<vmem>>, vector<1x256xf32>
    %37 = arith.mulf %28, %29 : vector<1x256xf32>
    %cst_16 = arith.constant 0.000000e+00 : f32
    %38 = vector.broadcast %cst_16 : f32 to vector<1x256xf32>
    %39 = arith.select %35, %37, %38 : vector<1x256xi1>, vector<1x256xf32>
    %40 = arith.addf %36, %39 : vector<1x256xf32>
    %c0_17 = arith.constant 0 : index
    %c0_18 = arith.constant 0 : index
    %41 = vector.load %arg7[%c0_17, %c0_18] : memref<1x256xf32, #tpu.memory_space<vmem>>, vector<1x256xf32>
    tpu.vector_store %arg7[%c0_17, %c0_18], %40 {strides = array<i32>} : memref<1x256xf32, #tpu.memory_space<vmem>>, vector<1x256xf32>,
    %c0_19 = arith.constant 0 : index
    %c0_20 = arith.constant 0 : index
    %42 = vector.load %arg8[%c0_19, %c0_20] : memref<1x256xf32, #tpu.memory_space<vmem>>, vector<1x256xf32>
    %cst_21 = arith.constant 0.000000e+00 : f32
    %43 = vector.broadcast %cst_21 : f32 to vector<1x256xf32>
    %44 = arith.select %35, %28, %43 : vector<1x256xi1>, vector<1x256xf32>
    %45 = arith.addf %42, %44 : vector<1x256xf32>
    %c0_22 = arith.constant 0 : index
    %c0_23 = arith.constant 0 : index
    %46 = vector.load %arg8[%c0_22, %c0_23] : memref<1x256xf32, #tpu.memory_space<vmem>>, vector<1x256xf32>
    tpu.vector_store %arg8[%c0_22, %c0_23], %45 {strides = array<i32>} : memref<1x256xf32, #tpu.memory_space<vmem>>, vector<1x256xf32>,
    %c0_i32_24 = arith.constant 0 : i32
    %47 = arith.cmpi eq, %arg1, %c0_i32_24 : i32
    %48 = arith.extui %47 : i1 to i32
    %c0_i32_25 = arith.constant 0 : i32
    %49 = arith.cmpi ne, %48, %c0_i32_25 : i32
    scf.if %49 {
      %c0_26 = arith.constant 0 : index
      %c0_27 = arith.constant 0 : index
      %50 = vector.load %arg7[%c0_26, %c0_27] : memref<1x256xf32, #tpu.memory_space<vmem>>, vector<1x256xf32>
      %cst_28 = arith.constant dense<0.000000e+00> : vector<1xf32>
      %51 = vector.multi_reduction <add>, %50, %cst_28 [1] : vector<1x256xf32> to vector<1xf32>
      %52 = vector.shape_cast %51 : vector<1xf32> to vector<1x1xf32>
      %53 = vector.shape_cast %52 : vector<1x1xf32> to vector<1x1x1xf32>
      %c0_29 = arith.constant 0 : index
      %c0_30 = arith.constant 0 : index
      %c0_31 = arith.constant 0 : index
      %54 = vector.load %arg5[%c0_29, %c0_30, %c0_31] : memref<1x1x1xf32, #tpu.memory_space<vmem>>, vector<1x1x1xf32>
      tpu.vector_store %arg5[%c0_29, %c0_30, %c0_31], %53 {strides = array<i32>} : memref<1x1x1xf32, #tpu.memory_space<vmem>>, vector<1x1x1xf32>,
      %c0_32 = arith.constant 0 : index
      %c0_33 = arith.constant 0 : index
      %55 = vector.load %arg8[%c0_32, %c0_33] : memref<1x256xf32, #tpu.memory_space<vmem>>, vector<1x256xf32>
      %cst_34 = arith.constant dense<0.000000e+00> : vector<1xf32>
      %56 = vector.multi_reduction <add>, %55, %cst_34 [1] : vector<1x256xf32> to vector<1xf32>
      %57 = vector.shape_cast %56 : vector<1xf32> to vector<1x1xf32>
      %58 = vector.shape_cast %57 : vector<1x1xf32> to vector<1x1x1xf32>
      %c0_35 = arith.constant 0 : index
      %c0_36 = arith.constant 0 : index
      %c0_37 = arith.constant 0 : index
      %59 = vector.load %arg6[%c0_35, %c0_36, %c0_37] : memref<1x1x1xf32, #tpu.memory_space<vmem>>, vector<1x1x1xf32>
      tpu.vector_store %arg6[%c0_35, %c0_36, %c0_37], %58 {strides = array<i32>} : memref<1x1x1xf32, #tpu.memory_space<vmem>>, vector<1x1x1xf32>,
    } else {
    }
    return
  }
  func.func @transform_0(%arg0: i32, %arg1: i32) -> (i32, i32, i32) {
    %c0_i32 = arith.constant 0 : i32
    %c0_i32_0 = arith.constant 0 : i32
    return %arg0, %c0_i32, %arg1 : i32, i32, i32
  }
  func.func @transform_1(%arg0: i32, %arg1: i32) -> (i32, i32, i32) {
    %c0_i32 = arith.constant 0 : i32
    %c0_i32_0 = arith.constant 0 : i32
    return %arg0, %c0_i32, %arg1 : i32, i32, i32
  }
  func.func @transform_2(%arg0: i32, %arg1: i32) -> (i32, i32) {
    %c0_i32 = arith.constant 0 : i32
    %c0_i32_0 = arith.constant 0 : i32
    %c0_i32_1 = arith.constant 0 : i32
    return %c0_i32, %c0_i32_0 : i32, i32
  }
  func.func @transform_3(%arg0: i32, %arg1: i32) -> (i32, i32, i32) {
    %c0_i32 = arith.constant 0 : i32
    %c0_i32_0 = arith.constant 0 : i32
    %c0_i32_1 = arith.constant 0 : i32
    return %arg0, %c0_i32, %c0_i32_0 : i32, i32, i32
  }
  func.func @transform_4(%arg0: i32, %arg1: i32) -> (i32, i32, i32) {
    %c0_i32 = arith.constant 0 : i32
    %c0_i32_0 = arith.constant 0 : i32
    %c0_i32_1 = arith.constant 0 : i32
    return %arg0, %c0_i32, %c0_i32_0 : i32, i32, i32
  }
}

</mosaic_0001>

<bundles_post_ra>
// kernel: tpu_custom_call.1
= control target key start
LH: loop header
LB: loop body
LE: loop exit
PB: predicated region body
PF: predicated region fallthrough
CT: control target
= control target key end

     0   :  { %10 = vsyncpa [#allocation5], 0  ;;  %s978_s0 = inlined_call_operand.hbm [shape: f32[2,4,256], index: 0, kind: input, shape index: {}]   ;;  %s979_s1 = inlined_call_operand.vmem [shape: s32[2,1,256], index: 1, kind: input, shape index: {}]   ;;  %s980_s2 = inlined_call_operand.vmem [shape: f32[4,1], index: 2, kind: input, shape index: {}]   ;;  %s981_s3 = inlined_call_operand.vmem [shape: f32[2,1,1], index: 3, kind: output, shape index: {0}]   ;;  %s982_s4 = inlined_call_operand.vmem [shape: f32[2,1,1], index: 4, kind: output, shape index: {1}]  }
   0x1   :  { %12 = vsyncpa [#allocation5 + $0x1], 0  ;;  %s786_s15 = smov 0   ;;  %s788_s16 = smov 0  }
   0x2   :  { %s790_s17 = smov 0   ;;  %s792_s18 = smov 0  }
   0x3   :  { %s794_s19 = smov 0   ;;  %s796_s20 = smov 0  }
   0x4 LB: > { %s596_s21 = sadd.s32 4294967295, %s755_s20   ;;  %s30_s22 = sadd.s32 1, %s751_s19  ;;  %s755_s20 = sphi %s796_s20, %s18_s20   ;;  %s751_s19 = sphi %s794_s19, %s998_s19   ;;  %s747_s18 = sphi %s792_s18, %s997_s18   ;;  %s743_s17 = sphi %s790_s17, %s996_s17   ;;  %s739_s16 = sphi %s788_s16, %s995_s16   ;;  %s735_s15 = sphi %s786_s15, %s994_s15  }
   0x5   : > { %p32_p0 = scmp.ge.s32.totalorder %s30_s22, 2  ;;  %s39_s23 = sadd.s32 1, %s743_s17 }
   0x6   : > { %p46_p1 = scmp.ne.s32.totalorder %s743_s17, %s739_s16  ;;  %p47_p2 = scmp.eq.s32.totalorder %s755_s20, 0 }
   0x7   : > { %s1000_s22 = smov (%p32_p0, %s30_s22), 0  ;;  %p52_p4 = scmp.ne.s32.totalorder %s739_s16, %s735_s15 }
   0x8   : > { %p822_p3 = por %p47_p2, %p46_p1  ;;  %s34_s25 = ssub.s32 %s751_s19, %s1000_s22 }
   0x9   : > { %p53_p5 = scmp.eq.s32.totalorder %s596_s21, 0  ;;  %p37_p6 = scmp.eq.s32.totalorder %s34_s25, 0 }
   0xa   : > { %p615_p8 = scmp.lt.s32.totalorder %s755_s20, 2  ;;  %s180_s28 = sand.u32 1, %s743_s17  }
   0xb   : > { %p829_p7 = por %p53_p5, %p52_p4  ;;  %s608_s29 = sshll.u32 %s751_s19, 7 }
   0xc   : > { %s835_s27 = scalar_select %p37_p6, %s743_s17, %s39_s23  }
   0xd   : > { %s600_s30 = sshll.u32 %s180_s28, 3  ;;  %s842_s7 = scalar_lea.hbm %s978_s0, %s608_s29 }
   0xe   : > { %s184_s8 = scalar_lea.vmem [#allocation4], %s600_s30  ;;  %p846_p9 = pnand %p615_p8, %p822_p3 }
   0xf   : > { %s194_s9 = sshll.u32 %s184_s8, 4  ;;  %s181_s11 = scalar_lea.sflag [#allocation5], %s180_s28  ;;  %s850_s9 = int_to_ptr.vmem [resolvable:$true] %s194_s9 }
  0x10   : > { %s675_s12 = scalar_lea.hbm %s842_s7, 128  ;;  %p677_p13 = pneg %p846_p9 }
  0x11   : > { %p676_p12 = scmp.ne.s32.totalorder %s842_s7, %s675_s12  ;;  %s680_s15 = scalar_lea.hbm %s978_s0, 256 }
  0x12   : > { %p681_p2 = scmp.lt.u32.totalorder %s842_s7, %s978_s0  ;;  %p682_p3 = scmp.lt.u32.totalorder %s680_s15, %s675_s12 }
  0x13   : > { %p678_p0 = pnand %p677_p13, %p676_p12  ;;  %p684_p5 = scmp.lt.u32.totalorder %s675_s12, %s842_s7 }
  0x14   : > { %p683_p4 = por %p682_p3, %p681_p2 }
  0x15   : > { %p679_p1 = pneg %p678_p0 }
  0x16   : > { %p685_p6 = por %p684_p5, %p683_p4 }
  0x18   : > { %p686_p8 = pnand %p685_p6, %p679_p1 }
  0x1a   : > { %689 = shalt.err (!%p686_p8)
}
  0x1b   : > { %s690_s24 = scalar_lea.vmem %s850_s9, 128  ;;  %s757_s25 = smov [#allocation4]  }
  0x1c   : > { %p691_p12 = scmp.ne.s32.totalorder %s850_s9, %s690_s24  ;;  %s695_s28 = sshll.u32 %s757_s25, 4  ;;  %s696_s28 = int_to_ptr.vmem [resolvable:$false] %s695_s28 }
  0x1d   : > { %s697_s29 = scalar_lea.vmem %s696_s28, 256  ;;  %p698_p11 = scmp.lt.s32.totalorder %s850_s9, %s696_s28 }
  0x1e   : > { %p693_p0 = pnand %p691_p12, %p677_p13  ;;  %p699_p2 = scmp.lt.s32.totalorder %s697_s29, %s690_s24 }
  0x20   : > { %p694_p10 = pneg %p693_p0  ;;  %p700_p3 = por %p699_p2, %p698_p11 }
  0x22   : > { %p701_p4 = pnand %p700_p3, %p694_p10 }
  0x24   : > { %704 = shalt.err (!%p701_p4)
}
  0x25   : > { %614 = dma.hbm_to_vmem [thread:$0]  (!%p846_p9), %s842_s7, 128, %s850_s9, %s181_s11  }
  0x26   : > { %p986_p1 = scmp.lt.s32.totalorder %s755_s20, 3  ;;  %p987_p5 = scmp.ge.s32.totalorder %s755_s20, 1 }
  0x28   : > { %p212_p13 = pnand %p987_p5, %p986_p1 }
  0x29   : > { %s217_s30 = sand.u32 (!%p212_p13), 1, %s739_s16  }
  0x2a   : > { %215 = sbr.rel (%p212_p13) target bundleno = 360 (0x168), region = 32  ;;  %s604_s5 = sshll.u32 (!%p212_p13), %s217_s30, 3 }
  0x2b   : > { %s218_s6 = scalar_lea.sflag (!%p212_p13), [#allocation5], %s217_s30  ;;  %s221_s8 = scalar_lea.vmem (!%p212_p13), [#allocation4], %s604_s5 }
  0x31   : > { %730 = dma.done.wait (%p829_p7), %s218_s6, 128  }
  0x32   : > { %732 = vsyncadd (%p829_p7), %s218_s6, 4294967168  ;;  %v275_v0 = vlaneseq  ;;  %v758_v1 = vmov 0   ;;  %v759_v3 = vmov 0.0   ;;  %v283_v4 = vld [vmem:[%s980_s2] sm:$0xf]  ;;  %v281_v5 = vld [vmem:[%s221_s8] sm:$0xff] }
  0x33   : > { %667 = vset.pattern.permute.xlu0 %v758_v1  ;;  %v285_v6 = vcombine.high %v281_v5, %v281_v5  ;;  %vm287_vm1 = vcmask 1043456   ;;  %p257_p7 = scmp.lt.s32.totalorder %s747_s18, 1  ;;  %vm460_vm4 = vcmask 1040384   ;;  %vm466_vm5 = vcmask 0  }
  0x34   : > { %vm888_vm0 = vcmp.lt.s32.totalorder %v275_v0, 256  ;;  %363 = vperm.xlu0 %667, %v283_v4   ;;  %v288_v7 = vsel %vm287_vm1, %v281_v5, -inf  ;;  %v906_v26 = vshrl.u32 %v275_v0, 7 }
  0x35   : > { %279 = vst.msk [vmem:[#allocation2] sm:$0x3] %vm888_vm0, %v759_v3  ;;  %280 = vst.msk [vmem:[#allocation3] sm:$0x3] %vm888_vm0, %v759_v3  ;;  %v295_v8 = vsel %vm287_vm1, %v285_v6, -inf  ;;  %v289_v9 = vrot.slane %v288_v7, 4 }
  0x36   : > { %v296_v10 = vrot.slane %v295_v8, 4  ;;  %s1002_s18 = smov (!%p257_p7, %s747_s18), 1  ;;  %v914_v29 = vsub.s32 0, %v906_v26  ;;  %v917_v30 = vsub.s32 1, %v906_v26 }
  0x37   : > { %v290_v11 = vmax.f32 %v288_v7, %v289_v9  ;;  %s605_s26 = sshll.u32 %s1002_s18, 1  ;;  %v760_v9 = vmov 1966171168   ;;  %s270_s15 = scalar_lea.vmem %s982_s4, %s1002_s18 }
  0x38   : > { %v297_v12 = vmax.f32 %v295_v8, %v296_v10  ;;  %s263_s12 = scalar_lea.vmem %s979_s1, %s605_s26  ;;  %v402_v10 = vunpack.c.l.s4 %v760_v9  ;;  %s267_s24 = scalar_lea.vmem %s981_s3, %s1002_s18 }
  0x39   : > { %v291_v13 = vrot.slane %v290_v11, 2  ;;  %v282_v32 = vld [vmem:[%s263_s12] sm:$0x3] }
  0x3a   : > { %v298_v14 = vrot.slane %v297_v12, 2  ;;  %v335_v35 = vrot.slane %v282_v32, %v914_v29  ;;  %v339_v36 = vrot.slane %v282_v32, %v917_v30 }
  0x3b   : > { %v292_v15 = vmax.f32 %v290_v11, %v291_v13 }
  0x3c   : > { %v299_v16 = vmax.f32 %v297_v12, %v298_v14  ;;  %vm922_vm2 = vcmp.eq.s32.totalorder %v906_v26, %v335_v35  ;;  %vm927_vm3 = vcmp.eq.s32.totalorder %v906_v26, %v339_v36  ;;  %v393_v40 = vld [vmem:[#allocation2] sm:$0x3] }
  0x3d   : > { %v293_v17 = vrot.slane %v292_v15, 1 }
  0x3e   : > { %v300_v18 = vrot.slane %v299_v16, 1 }
  0x3f   : > { %v294_v19 = vmax.f32 %v292_v15, %v293_v17 }
  0x40   : > { %v301_v20 = vmax.f32 %v299_v16, %v300_v18 }
  0x42   : > { %v304_v21 = vcombine.low %v294_v19, %v301_v20  ;;  %v403_v19 = vunpack.c.0.s8 %v402_v10 }
  0x44   : > { %v306_v22 = vsub.f32 %v281_v5, %v304_v21 }
  0x46   : > { %v307_v23 = vmul.f32 1.442695, %v306_v22  ;;  %v343_v38 = vcombine.high %v306_v22, %v306_v22  ;;  %v345_v43 = vsel %vm922_vm2, %v306_v22, 0.0 }
  0x47   : > { %v347_v47 = vsel %vm287_vm1, %v345_v43, 0.0 }
  0x48   : > { %669 = vpow2.f32 %v307_v23  ;;  %v346_v44 = vsel %vm927_vm3, %v343_v38, 0.0  ;;  %v348_v51 = vrot.slane %v347_v47, 4 }
  0x49   : > { %v354_v48 = vsel %vm287_vm1, %v346_v44, 0.0 }
  0x4a   : > { %v355_v52 = vrot.slane %v354_v48, 4  ;;  %v349_v55 = vadd.f32 %v348_v51, %v347_v47 }
  0x4c   : > { %v356_v56 = vadd.f32 %v355_v52, %v354_v48  ;;  %v350_v57 = vrot.slane %v349_v55, 2 }
  0x4e   : > { %v357_v58 = vrot.slane %v356_v56, 2  ;;  %v351_v59 = vadd.f32 %v350_v57, %v349_v55 }
  0x50   : > { %v358_v60 = vadd.f32 %v357_v58, %v356_v56  ;;  %v352_v0 = vrot.slane %v351_v59, 1 }
  0x52   : > { %v670_v24 = vpop.eup %669  ;;  %v359_v1 = vrot.slane %v358_v60, 1  ;;  %v353_v13 = vadd.f32 %v352_v0, %v351_v59 }
  0x53   : > { %v310_v25 = vcombine.high %v670_v24, %v670_v24  ;;  %v312_v27 = vsel %vm287_vm1, %v670_v24, 0.0 }
  0x54   : > { %v313_v31 = vrot.slane %v312_v27, 4  ;;  %v360_v14 = vadd.f32 %v359_v1, %v358_v60 }
  0x55   : > { %v319_v28 = vsel %vm287_vm1, %v310_v25, 0.0 }
  0x56   : > { %v320_v33 = vrot.slane %v319_v28, 4  ;;  %v314_v34 = vadd.f32 %v313_v31, %v312_v27  ;;  %v406_v27 = vsub.s32 %v403_v19, %v906_v26 }
  0x58   : > { %v321_v37 = vadd.f32 %v320_v33, %v319_v28  ;;  %v315_v39 = vrot.slane %v314_v34, 2 }
  0x5a   : > { %v322_v42 = vrot.slane %v321_v37, 2  ;;  %v316_v45 = vadd.f32 %v315_v39, %v314_v34 }
  0x5c   : > { %v323_v46 = vadd.f32 %v322_v42, %v321_v37  ;;  %v317_v49 = vrot.slane %v316_v45, 1  ;;  %v422_v37 = vld [vmem:[#allocation3] sm:$0x3] }
  0x5e   : > { %v324_v50 = vrot.slane %v323_v46, 1  ;;  %v318_v53 = vadd.f32 %v317_v49, %v316_v45 }
  0x60   : > { %v325_v54 = vadd.f32 %v324_v50, %v323_v46  ;;  %671 = vlog2.f32 %v318_v53 }
  0x62   : > { %673 = vlog2.f32 %v325_v54 }
  0x6a   : > { %v672_v5 = vpop.eup %671 }
  0x6b   : > { %v327_v15 = vmul.f32 0.6931472, %v672_v5 }
  0x6c   : > { %v674_v8 = vpop.eup %673 }
  0x6d   : > { %v329_v16 = vmul.f32 0.6931472, %v674_v8  ;;  %v382_v24 = vsub.f32 %v327_v15, %v353_v13 }
  0x6f   : > { %v383_v25 = vsub.f32 %v329_v16, %v360_v14 }
  0xb3   : > { %v364_v61 = vpop.permute.xlu0 %363 }
  0xb4   : > { %v366_v62 = vsel %vm922_vm2, %v364_v61, 0.0  ;;  %v367_v63 = vsel %vm927_vm3, %v364_v61, 0.0 }
  0xb5   : > { %v368_v3 = vsel %vm287_vm1, %v366_v62, 0.0  ;;  %v375_v4 = vsel %vm287_vm1, %v367_v63, 0.0 }
  0xb6   : > { %v369_v6 = vrot.slane %v368_v3, 4  ;;  %v376_v7 = vrot.slane %v375_v4, 4 }
  0xb8   : > { %v370_v11 = vadd.f32 %v369_v6, %v368_v3  ;;  %v377_v12 = vadd.f32 %v376_v7, %v375_v4 }
  0xba   : > { %v371_v17 = vrot.slane %v370_v11, 2  ;;  %v378_v18 = vrot.slane %v377_v12, 2 }
  0xbc   : > { %v372_v20 = vadd.f32 %v371_v17, %v370_v11  ;;  %v379_v21 = vadd.f32 %v378_v18, %v377_v12 }
  0xbe   : > { %v373_v22 = vrot.slane %v372_v20, 1  ;;  %v380_v23 = vrot.slane %v379_v21, 1 }
  0xc0   : > { %v374_v28 = vadd.f32 %v373_v22, %v372_v20  ;;  %v381_v31 = vadd.f32 %v380_v23, %v379_v21 }
  0xc2   : > { %v394_v32 = vmul.f32 %v382_v24, %v374_v28  ;;  %v395_v33 = vmul.f32 %v383_v25, %v381_v31  ;;  %v427_v34 = vcombine.low %v374_v28, %v381_v31 }
  0xc4   : > { %v400_v35 = vcombine.low %v394_v32, %v395_v33  ;;  %v434_v36 = vrot.slane %v427_v34, %v406_v27 }
  0xc6   : > { %v407_v38 = vrot.slane %v400_v35, %v406_v27  ;;  %v441_v39 = vrot.slane %v434_v36, %v406_v27 }
  0xc8   : > { %v414_v41 = vrot.slane %v407_v38, %v406_v27  ;;  %v443_v42 = vadd.f32 %v441_v39, %v422_v37 }
  0xca   : > { %v416_v43 = vadd.f32 %v414_v41, %v393_v40  ;;  %444 = vst.msk [vmem:[#allocation3] sm:$0x3] %vm888_vm0, %v443_v42 }
  0xcc   : > { %421 = vst.msk [vmem:[#allocation2] sm:$0x3] %vm888_vm0, %v416_v43 }
  0xd1   : > { %v468_v26 = vld [vmem:[#allocation3] sm:$0x3] }
  0xd2   : > { %v473_v44 = vrot.slane %v468_v26, %v914_v29  ;;  %v477_v45 = vrot.slane %v468_v26, %v917_v30 }
  0xd3   : > { %v448_v46 = vld [vmem:[#allocation2] sm:$0x3] }
  0xd4   : > { %v480_v47 = vsel %vm460_vm4, %v473_v44, 0.0  ;;  %v481_v48 = vsel %vm460_vm4, %v477_v45, 0.0  ;;  %v453_v49 = vrot.slane %v448_v46, %v914_v29  ;;  %v457_v50 = vrot.slane %v448_v46, %v917_v30 }
  0xd5   : > { %v482_v51 = vadd.f32 %v481_v48, %v480_v47 }
  0xd6   : > { %v461_v52 = vsel %vm460_vm4, %v453_v49, 0.0  ;;  %v462_v53 = vsel %vm460_vm4, %v457_v50, 0.0 }
  0xd7   : > { %483 = vadd.xlane.f32.xlu1 %v482_v51  ;;  %v463_v2 = vadd.f32 %v462_v53, %v461_v52 }
  0xd9   : > { %464 = vadd.xlane.f32.xlu0 %v463_v2 }
 0x164   : > { %v484_v54 = vpop.xlane.xlu1 %483 }
 0x165   : > { %485 = vst.msk [vmem:[%s270_s15] sm:$0x1] %vm466_vm5, %v484_v54 }
 0x166   : > { %v465_v29 = vpop.xlane.xlu0 %464 }
 0x167   : > { %467 = vst.msk [vmem:[%s267_s24] sm:$0x1] %vm466_vm5, %v465_v29 }
 0x168 PF: > { %s18_s20 = sadd.s32 1, %s755_s20   ;;  %s994_s15 = smov %s739_s16 }
 0x169   : > { %p15_p9 = scmp.ge.s32.totalorder %s18_s20, 4   ;;  %s995_s16 = smov %s743_s17 }
 0x16a   : > { %s996_s17 = smov %s835_s27  ;;  %s997_s18 = smov %s751_s19 }
 0x16b   : > { %s998_s19 = smov %s1000_s22  ;;  %17 = sbr.rel (!%p15_p9) target bundleno = 4 (0x4), region = 95 }
 0x172   :  { %515 = vsyncpa [#allocation5], 1 }
 0x173   :  { %517 = vsyncpa [#allocation5 + $0x1], 1 }

</bundles_post_ra>
